<compile_context>
chip_gen: v7x
topology: tpu7x:2x2x1
jax: 0.10.0
libtpu: 0.0.40
codegen_flags: <defaults>
</compile_context>

<pallas_src>
import functools
import math

import jax
import jax.numpy as jnp
from jax.experimental import pallas as pl
from jax.experimental.pallas import tpu as pltpu

LN_EPS = 1e-5                        # apex FusedLayerNorm default eps
_NEG_INF = -1e30
_DEFAULT_SCOPED_VMEM = 32 * 1024 * 1024


# ---------------------------------------------------------------------------
# helpers
# ---------------------------------------------------------------------------
def _cdiv(a, b):
    return -(-a // b)


def _round_up(x, m):
    return ((x + m - 1) // m) * m


def _row_tile(n_rows, tm_max):
    """Row tile (multiple of 8) with minimal padding, keeping >= 2 grid steps when possible."""
    n_tiles = _cdiv(n_rows, tm_max)
    if n_tiles < 2 and n_rows > 8:
        n_tiles = 2                  # keep >= 2 grid steps so megacore / v7x has work to split
    tm = _round_up(_cdiv(n_rows, n_tiles), 8)
    return tm, n_tiles * tm


def _pad_rows(x2d, n_padded):
    n = x2d.shape[0]
    if n_padded == n:
        return x2d
    return jnp.pad(x2d, ((0, n_padded - n), (0, 0)))


def _vmem_cap_bytes():
    try:
        return int(0.85 * pltpu.get_tpu_info().vmem_capacity_bytes)
    except Exception:
        return 48 * 1024 * 1024      # conservative fallback, safe on v7x's 64 MiB physical VMEM


def _compiler_params(semantics, est_vmem_bytes):
    kwargs = {"dimension_semantics": semantics}
    if est_vmem_bytes > 0.75 * _DEFAULT_SCOPED_VMEM:
        kwargs["vmem_limit_bytes"] = int(
            min(max(1.25 * est_vmem_bytes, _DEFAULT_SCOPED_VMEM), _vmem_cap_bytes()))
    return pltpu.CompilerParams(**kwargs)


def _resident_spec(shape, index_map):
    # Constant-index weights: the block never changes, so single-buffer it
    # (halves resident weight VMEM vs the default double buffering).
    return pl.BlockSpec(shape, index_map, pipeline_mode=pl.Buffered(1))


def _layer_norm_f32(y_f32, gamma, beta, eps):
    mean = jnp.mean(y_f32, axis=-1, keepdims=True)
    c = y_f32 - mean
    var = jnp.mean(c * c, axis=-1, keepdims=True)
    return c * jax.lax.rsqrt(var + eps) * gamma.astype(jnp.float32) + beta.astype(jnp.float32)


# ---------------------------------------------------------------------------
# kernels
# ---------------------------------------------------------------------------
def _attn_block_kernel(H, D, eps, with_pos, with_bias, *refs):
    """One batch: QKV proj + per-head softmax attention + out_proj + residual + norm1."""
    it = iter(refs)
    x_ref = next(it)
    pos_ref = next(it) if with_pos else None
    bias_ref = next(it) if with_bias else None
    (wqk_ref, bqk_ref, wv_ref, bv_ref,
     woT_ref, bo_ref, g_ref, be_ref, o_ref) = it

    E = H * D
    mxu = wqk_ref.dtype                               # MXU operand dtype (bf16 in production)

    x_f32 = x_ref[0].astype(jnp.float32)              # (S, E)  residual / value input
    if with_pos:
        xp_f32 = x_f32 + pos_ref[0].astype(jnp.float32)
    else:
        xp_f32 = x_f32

    # q|k in one wide MXU matmul (softmax scale already folded into Wq / bq).
    qk = jnp.dot(xp_f32.astype(mxu), wqk_ref[...],
                 preferred_element_type=jnp.float32) + bqk_ref[...]
    v = jnp.dot(x_f32.astype(mxu), wv_ref[...],
                preferred_element_type=jnp.float32) + bv_ref[...]
    q = qk[:, :E]
    k = qk[:, E:]

    # TODO(synk): group heads into one block-diagonal dot to fill the 256-wide MXU better.
    ctx_heads = []
    for h in range(H):                                # static head loop, in-VMEM slices only
        qh = q[:, h * D:(h + 1) * D]
        kh = k[:, h * D:(h + 1) * D]
        vh = v[:, h * D:(h + 1) * D]
        s = jax.lax.dot_general(qh.astype(mxu), kh.astype(mxu),
                                (((1,), (1,)), ((), ())),
                                preferred_element_type=jnp.float32)      # (S, S) f32
        if with_bias:
            s = s + bias_ref[0]                       # (1, S) key-padding bias, broadcast over rows
        m = jnp.max(s, axis=-1, keepdims=True)
        p = jnp.exp(s - m)
        l = jnp.sum(p, axis=-1, keepdims=True)
        oh = jnp.dot(p.astype(mxu), vh.astype(mxu),
                     preferred_element_type=jnp.float32)
        ctx_heads.append(oh * pl.reciprocal(l, approx=True))
    ctx = ctx_heads[0] if H == 1 else jnp.concatenate(ctx_heads, axis=-1)   # (S, E) f32

    y = jnp.dot(ctx.astype(mxu), woT_ref[...], preferred_element_type=jnp.float32)
    y = y + bo_ref[...] + x_f32                       # out_proj bias + residual (dropout = identity)
    o_ref[0] = _layer_norm_f32(y, g_ref[...], be_ref[...], eps).astype(o_ref.dtype)


def _ffn_ln_kernel(eps, activation, x_ref, w1T_ref, b1_ref, w2T_ref, b2_ref,
                   g_ref, be_ref, o_ref):
    """linear1 + activation + linear2 + residual + LayerNorm (norm2), fused per row tile."""
    mxu = w1T_ref.dtype
    x_in = x_ref[...]
    x_f32 = x_in.astype(jnp.float32)
    h = jnp.dot(x_in.astype(mxu), w1T_ref[...], preferred_element_type=jnp.float32)
    h = h + b1_ref[...]
    if activation == "relu":
        h = jnp.maximum(h, 0.0)
    elif activation == "gelu":
        h = jax.nn.gelu(h, approximate=False)
    else:
        # TODO(synk): 'glu' halves the feature width; not implemented here.
        raise NotImplementedError(f"activation {activation!r} not supported")
    y = jnp.dot(h.astype(mxu), w2T_ref[...], preferred_element_type=jnp.float32)
    y = y + b2_ref[...] + x_f32
    o_ref[...] = _layer_norm_f32(y, g_ref[...], be_ref[...], eps).astype(o_ref.dtype)


# ---------------------------------------------------------------------------
# pallas_call wrappers
# ---------------------------------------------------------------------------
def _attention_block(x_bf, pos_bf, key_bias, prepared, H, D, eps):
    """[K1] grid over batch (batch-first): QKV + MHA + out_proj + residual + norm1."""
    B, S, E = x_bf.shape
    with_pos = pos_bf is not None
    with_bias = key_bias is not None

    mxu_itm = jnp.dtype(prepared["wqk"].dtype).itemsize
    in_itm = jnp.dtype(x_bf.dtype).itemsize
    n_stream = 1 + (1 if with_pos else 0)
    est = ((4 * E * E + 4 * E) * mxu_itm
           + (2 * n_stream + 2) * S * E * in_itm
           + (6 * S * E + S * S) * 4)

    def per_batch(b):
        return (b, 0, 0)

    def const(b):
        return (0, 0)

    in_specs = [pl.BlockSpec((1, S, E), per_batch)]
    args = [x_bf]
    if with_pos:
        in_specs.append(pl.BlockSpec((1, S, E), per_batch))
        args.append(pos_bf)
    if with_bias:
        in_specs.append(pl.BlockSpec((1, 1, S), per_batch))
        args.append(key_bias)
    in_specs += [
        _resident_spec((E, 2 * E), const),     # [Wq*sqrt(D) | Wk]  (bf16, single-buffered)
        _resident_spec((1, 2 * E), const),     # [bq*sqrt(D) | bk]
        _resident_spec((E, E), const),         # Wv
        _resident_spec((1, E), const),         # bv
        _resident_spec((E, E), const),         # Wo^T
        _resident_spec((1, E), const),         # bo
        _resident_spec((1, E), const),         # gamma1
        _resident_spec((1, E), const),         # beta1
    ]
    args += [prepared["wqk"], prepared["bqk"], prepared["wv"], prepared["bv"],
             prepared["woT"], prepared["bo"], prepared["g1"], prepared["be1"]]

    return pl.pallas_call(
        functools.partial(_attn_block_kernel, H, D, eps, with_pos, with_bias),
        out_shape=jax.ShapeDtypeStruct((B, S, E), x_bf.dtype),
        grid_spec=pltpu.PrefetchScalarGridSpec(
            num_scalar_prefetch=0,
            grid=(B,),
            in_specs=in_specs,
            out_specs=pl.BlockSpec((1, S, E), per_batch),
        ),
        compiler_params=_compiler_params(("parallel",), est),
    )(*args)


def _ffn_ln(x2d, prepared, tm, eps, activation):
    """[K2] row-tiled FFN + residual + norm2."""
    Np, E = x2d.shape
    F = prepared["w1T"].shape[1]
    mxu_itm = jnp.dtype(prepared["w1T"].dtype).itemsize
    in_itm = jnp.dtype(x2d.dtype).itemsize
    est = ((2 * E * F + F + 3 * E) * mxu_itm
           + 4 * tm * E * in_itm
           + (tm * F + 2 * tm * E) * 4)

    def row(i):
        return (i, 0)

    def const(i):
        return (0, 0)

    return pl.pallas_call(
        functools.partial(_ffn_ln_kernel, eps, activation),
        out_shape=jax.ShapeDtypeStruct((Np, E), x2d.dtype),
        grid_spec=pltpu.PrefetchScalarGridSpec(
            num_scalar_prefetch=0,
            grid=(Np // tm,),
            in_specs=[
                pl.BlockSpec((tm, E), row),          # norm1 output rows
                _resident_spec((E, F), const),       # W1^T  (bf16, single-buffered)
                _resident_spec((1, F), const),       # b1
                _resident_spec((F, E), const),       # W2^T
                _resident_spec((1, E), const),       # b2
                _resident_spec((1, E), const),       # gamma2
                _resident_spec((1, E), const),       # beta2
            ],
            out_specs=pl.BlockSpec((tm, E), row),
        ),
        compiler_params=_compiler_params(("parallel",), est),
    )(x2d, prepared["w1T"], prepared["b1"], prepared["w2T"], prepared["b2"],
      prepared["g2"], prepared["be2"])


# ---------------------------------------------------------------------------
# module-level wrapper
# ---------------------------------------------------------------------------
def prepare_params(p, *, nhead, mxu_dtype=jnp.bfloat16):
    """One-time parameter prep (split / transpose / fold / cast) — OUTSIDE the jitted hot path.

    * the module's softmax scale sqrt(head_dim) (it MULTIPLIES q.k^T) is folded into Wq / bq;
    * Wq|Wk are concatenated into one (E, 2E) operand for a single wide MXU matmul;
    * nn.Linear weights are pre-transposed; matmul weights are cast to `mxu_dtype`
      (bf16 = MXU peak on all generations); biases and LayerNorm params stay f32.
    """
    f32 = jnp.float32
    E = p["in_proj_weight"].shape[-1]
    D = E // nhead
    scale = jnp.float32(math.sqrt(D))
    wq = p["in_proj_weight"][0].astype(f32) * scale
    wk = p["in_proj_weight"][1].astype(f32)
    bq = p["in_proj_bias"][0].astype(f32) * scale
    bk = p["in_proj_bias"][1].astype(f32)
    return {
        "wqk": jnp.concatenate([wq, wk], axis=1).astype(mxu_dtype),     # (E, 2E)
        "bqk": jnp.concatenate([bq, bk]).reshape(1, 2 * E),
        "wv": p["in_proj_weight"][2].astype(mxu_dtype),
        "bv": p["in_proj_bias"][2].reshape(1, E).astype(f32),
        "woT": p["out_proj_weight"].T.astype(mxu_dtype),                # nn.Linear: x @ W^T
        "bo": p["out_proj_bias"].reshape(1, E).astype(f32),
        "w1T": p["linear1_weight"].T.astype(mxu_dtype),
        "b1": p["linear1_bias"].reshape(1, -1).astype(f32),
        "w2T": p["linear2_weight"].T.astype(mxu_dtype),
        "b2": p["linear2_bias"].reshape(1, E).astype(f32),
        "g1": p["norm1_weight"].reshape(1, E).astype(f32),
        "be1": p["norm1_bias"].reshape(1, E).astype(f32),
        "g2": p["norm2_weight"].reshape(1, E).astype(f32),
        "be2": p["norm2_bias"].reshape(1, E).astype(f32),
    }


@functools.partial(jax.jit, static_argnames=("nhead", "activation", "tm_max"))
def transformer_encoder_layer(src, pos, key_padding_mask, prepared, *,
                              nhead, activation="relu", tm_max=512):
    """Post-norm TransformerEncoderLayer forward (eval mode).

    src, pos: (S, B, E) seq-first like the PyTorch module.
    key_padding_mask: optional (B, S) bool, True = padded key position.
    tm_max: FFN row tile (512 targets v5e/v6e HBM roofline; use 256 on v7x's 64 MiB VMEM).
    """
    S, B, E = src.shape
    H = nhead
    D = E // H
    assert H * D == E, "d_model must be divisible by nhead"
    dtype = src.dtype

    # Batch-first layout: the attention kernel reads / writes full-E lane-dense per-batch
    # blocks and q/k/v/ctx never round-trip HBM in head-split (B*H,S,D) layouts.
    x_bf = jnp.transpose(src, (1, 0, 2))                          # (B, S, E)
    pos_bf = None if pos is None else jnp.transpose(pos, (1, 0, 2))

    if key_padding_mask is None:
        key_bias = None
    else:
        key_bias = jnp.where(key_padding_mask, _NEG_INF, 0.0).astype(jnp.float32)
        key_bias = key_bias.reshape(B, 1, S)                      # once per batch, not per head

    # [K1] fused QKV + attention + out_proj + residual + norm1 (dropout = identity in eval).
    src1_bf = _attention_block(x_bf, pos_bf, key_bias, prepared, H, D, LN_EPS)

    # [K2] fused FFN + residual + norm2, row-tiled over B*S rows.
    N = B * S
    tm, Np = _row_tile(N, tm_max)
    x2d = _pad_rows(src1_bf.reshape(N, E), Np)
    out2d = _ffn_ln(x2d, prepared, tm, LN_EPS, activation)

    out_bf = out2d[:N].reshape(B, S, E)
    return jnp.transpose(out_bf, (1, 0, 2)).astype(dtype)


# ---------------------------------------------------------------------------
# pure-JAX reference (same math and operand-rounding policy as the kernels:
# prepared bf16 matmul operands, f32 accumulation / softmax / LayerNorm)
# ---------------------------------------------------------------------------
def _reference(src, pos, key_padding_mask, prepared, nhead, activation="relu"):
    S, B, E = src.shape
    H = nhead
    D = E // H
    mxu = prepared["wqk"].dtype
    f32 = jnp.float32

    def mm(a, b):
        return jnp.dot(a.astype(mxu), b.astype(mxu), preferred_element_type=f32)

    x = src.astype(f32)
    xp = x if pos is None else x + pos.astype(f32)

    qk = mm(xp, prepared["wqk"]) + prepared["bqk"]                # (S, B, 2E)
    v = mm(x, prepared["wv"]) + prepared["bv"]                    # (S, B, E)
    q, k = qk[..., :E], qk[..., E:]

    def heads(t):
        return t.reshape(S, B, H, D).transpose(1, 2, 0, 3)        # (B, H, S, D)

    qh, kh, vh = heads(q), heads(k), heads(v)
    s = jnp.einsum("bhsd,bhtd->bhst", qh.astype(mxu), kh.astype(mxu),
                   preferred_element_type=f32)
    if key_padding_mask is not None:
        s = s + jnp.where(key_padding_mask, _NEG_INF, 0.0).astype(f32)[:, None, None, :]
    m = jnp.max(s, axis=-1, keepdims=True)
    p = jnp.exp(s - m)
    l = jnp.sum(p, axis=-1, keepdims=True)
    ctx = jnp.einsum("bhst,bhtd->bhsd", p.astype(mxu), vh.astype(mxu),
                     preferred_element_type=f32) / l
    ctx = ctx.transpose(2, 0, 1, 3).reshape(S, B, E)

    y = mm(ctx, prepared["woT"]) + prepared["bo"] + x
    s1 = _layer_norm_f32(y, prepared["g1"], prepared["be1"], LN_EPS)

    h = mm(s1, prepared["w1T"]) + prepared["b1"]
    h = jnp.maximum(h, 0.0) if activation == "relu" else jax.nn.gelu(h, approximate=False)
    y2 = mm(h, prepared["w2T"]) + prepared["b2"] + s1
    return _layer_norm_f32(y2, prepared["g2"], prepared["be2"], LN_EPS)


# ---------------------------------------------------------------------------
# demo
# ---------------------------------------------------------------------------
if __name__ == "__main__":
    d_model, nhead, dim_ff = 32, 4, 64
    S, B = 8, 2

    key = jax.random.PRNGKey(0)
    ks = jax.random.split(key, 14)
    f32 = jnp.float32

    def w_init(k, shape, scale):
        return scale * jax.random.normal(k, shape, f32)

    params = {
        "in_proj_weight": w_init(ks[0], (3, d_model, d_model), 1.0 / math.sqrt(d_model)),
        "in_proj_bias": w_init(ks[1], (3, d_model), 0.02),
        "out_proj_weight": w_init(ks[2], (d_model, d_model), 1.0 / math.sqrt(d_model)),
        "out_proj_bias": w_init(ks[3], (d_model,), 0.02),
        "linear1_weight": w_init(ks[4], (dim_ff, d_model), 1.0 / math.sqrt(d_model)),
        "linear1_bias": w_init(ks[5], (dim_ff,), 0.02),
        "linear2_weight": w_init(ks[6], (d_model, dim_ff), 1.0 / math.sqrt(dim_ff)),
        "linear2_bias": w_init(ks[7], (d_model,), 0.02),
        "norm1_weight": 1.0 + 0.1 * jax.random.normal(ks[8], (d_model,), f32),
        "norm1_bias": 0.1 * jax.random.normal(ks[9], (d_model,), f32),
        "norm2_weight": 1.0 + 0.1 * jax.random.normal(ks[10], (d_model,), f32),
        "norm2_bias": 0.1 * jax.random.normal(ks[11], (d_model,), f32),
    }

    src = jax.random.normal(ks[12], (S, B, d_model), f32)
    pos = 0.1 * jax.random.normal(ks[13], (S, B, d_model), f32)
    key_padding_mask = jnp.zeros((B, S), jnp.bool_).at[1, S - 2:].set(True)

    prepared = prepare_params(params, nhead=nhead)   # one-time prep (bf16 MXU weights)

    # no mask
    out = transformer_encoder_layer(src, pos, None, prepared, nhead=nhead)
    jax.block_until_ready(out)
    ref = _reference(src, pos, None, prepared, nhead)
    assert out.shape == (S, B, d_model)
    assert bool(jnp.all(jnp.isfinite(out)))
    assert jnp.allclose(out, ref, atol=1e-2, rtol=1e-2), "mismatch vs reference (no mask)"

    # with key-padding mask
    out_m = transformer_encoder_layer(src, pos, key_padding_mask, prepared, nhead=nhead)
    jax.block_until_ready(out_m)
    ref_m = _reference(src, pos, key_padding_mask, prepared, nhead)
    assert bool(jnp.all(jnp.isfinite(out_m)))
    assert jnp.allclose(out_m, ref_m, atol=1e-2, rtol=1e-2), "mismatch vs reference (masked)"

    print("KERNEL_OK")
</pallas_src>

<mosaic_0001>
module attributes {stable_mosaic.version = 11 : i64} {
  func.func @_ffn_ln_kernel(%arg0: i32, %arg1: memref<8x32xf32, #tpu.memory_space<vmem>>, %arg2: memref<32x64xbf16, #tpu.memory_space<vmem>>, %arg3: memref<1x64xf32, #tpu.memory_space<vmem>>, %arg4: memref<64x32xbf16, #tpu.memory_space<vmem>>, %arg5: memref<1x32xf32, #tpu.memory_space<vmem>>, %arg6: memref<1x32xf32, #tpu.memory_space<vmem>>, %arg7: memref<1x32xf32, #tpu.memory_space<vmem>>, %arg8: memref<8x32xf32, #tpu.memory_space<vmem>>) attributes {dimension_semantics = [#tpu.dimension_semantics<parallel>], iteration_bounds = array<i64: 2>, scalar_prefetch = 0 : i64, scratch_operands = 0 : i64, tpu.core_type = #tpu.core_type<tc>, window_params = [{transform_indices = @transform_0, window_bounds = array<i64: 8, 32>}, {pipeline_mode = #tpu.pipeline_mode<synchronous>, transform_indices = @transform_1, window_bounds = array<i64: 32, 64>}, {pipeline_mode = #tpu.pipeline_mode<synchronous>, transform_indices = @transform_2, window_bounds = array<i64: 1, 64>}, {pipeline_mode = #tpu.pipeline_mode<synchronous>, transform_indices = @transform_3, window_bounds = array<i64: 64, 32>}, {pipeline_mode = #tpu.pipeline_mode<synchronous>, transform_indices = @transform_4, window_bounds = array<i64: 1, 32>}, {pipeline_mode = #tpu.pipeline_mode<synchronous>, transform_indices = @transform_5, window_bounds = array<i64: 1, 32>}, {pipeline_mode = #tpu.pipeline_mode<synchronous>, transform_indices = @transform_6, window_bounds = array<i64: 1, 32>}, {transform_indices = @transform_7, window_bounds = array<i64: 8, 32>}]} {
    %c0 = arith.constant 0 : index
    %c0_0 = arith.constant 0 : index
    %0 = vector.load %arg1[%c0, %c0_0] : memref<8x32xf32, #tpu.memory_space<vmem>>, vector<8x32xf32>
    %1 = arith.truncf %0 : vector<8x32xf32> to vector<8x32xbf16>
    %c0_1 = arith.constant 0 : index
    %c0_2 = arith.constant 0 : index
    %2 = vector.load %arg2[%c0_1, %c0_2] : memref<32x64xbf16, #tpu.memory_space<vmem>>, vector<32x64xbf16>
    %cst = arith.constant dense<0.000000e+00> : vector<8x64xf32>
    %3 = tpu.matmul %1, %2, %cst {dimension_numbers = #tpu.dot_dimension_numbers<[1], [0], [0], [1], [0, 0, 1, 1], [], []>} : vector<8x32xbf16>, vector<32x64xbf16>, vector<8x64xf32> -> vector<8x64xf32>
    %c0_3 = arith.constant 0 : index
    %c0_4 = arith.constant 0 : index
    %4 = vector.load %arg3[%c0_3, %c0_4] : memref<1x64xf32, #tpu.memory_space<vmem>>, vector<1x64xf32>
    %5 = vector.broadcast %4 : vector<1x64xf32> to vector<8x64xf32>
    %6 = arith.addf %3, %5 : vector<8x64xf32>
    %cst_5 = arith.constant 0.000000e+00 : f32
    %7 = vector.broadcast %cst_5 : f32 to vector<8x64xf32>
    %8 = arith.maximumf %6, %7 : vector<8x64xf32>
    %9 = arith.truncf %8 : vector<8x64xf32> to vector<8x64xbf16>
    %c0_6 = arith.constant 0 : index
    %c0_7 = arith.constant 0 : index
    %10 = vector.load %arg4[%c0_6, %c0_7] : memref<64x32xbf16, #tpu.memory_space<vmem>>, vector<64x32xbf16>
    %cst_8 = arith.constant dense<0.000000e+00> : vector<8x32xf32>
    %11 = tpu.matmul %9, %10, %cst_8 {dimension_numbers = #tpu.dot_dimension_numbers<[1], [0], [0], [1], [0, 0, 1, 1], [], []>} : vector<8x64xbf16>, vector<64x32xbf16>, vector<8x32xf32> -> vector<8x32xf32>
    %c0_9 = arith.constant 0 : index
    %c0_10 = arith.constant 0 : index
    %12 = vector.load %arg5[%c0_9, %c0_10] : memref<1x32xf32, #tpu.memory_space<vmem>>, vector<1x32xf32>
    %13 = vector.broadcast %12 : vector<1x32xf32> to vector<8x32xf32>
    %14 = arith.addf %11, %13 : vector<8x32xf32>
    %15 = arith.addf %14, %0 : vector<8x32xf32>
    %c0_11 = arith.constant 0 : index
    %c0_12 = arith.constant 0 : index
    %16 = vector.load %arg6[%c0_11, %c0_12] : memref<1x32xf32, #tpu.memory_space<vmem>>, vector<1x32xf32>
    %c0_13 = arith.constant 0 : index
    %c0_14 = arith.constant 0 : index
    %17 = vector.load %arg7[%c0_13, %c0_14] : memref<1x32xf32, #tpu.memory_space<vmem>>, vector<1x32xf32>
    %cst_15 = arith.constant dense<0.000000e+00> : vector<8xf32>
    %18 = vector.multi_reduction <add>, %15, %cst_15 [1] : vector<8x32xf32> to vector<8xf32>
    %19 = vector.shape_cast %18 : vector<8xf32> to vector<8x1xf32>
    %cst_16 = arith.constant 3.200000e+01 : f32
    %20 = vector.broadcast %cst_16 : f32 to vector<8x1xf32>
    %21 = arith.divf %19, %20 : vector<8x1xf32>
    %22 = vector.broadcast %21 : vector<8x1xf32> to vector<8x32xf32>
    %23 = arith.subf %15, %22 : vector<8x32xf32>
    %24 = arith.mulf %23, %23 : vector<8x32xf32>
    %cst_17 = arith.constant dense<0.000000e+00> : vector<8xf32>
    %25 = vector.multi_reduction <add>, %24, %cst_17 [1] : vector<8x32xf32> to vector<8xf32>
    %26 = vector.shape_cast %25 : vector<8xf32> to vector<8x1xf32>
    %cst_18 = arith.constant 3.200000e+01 : f32
    %27 = vector.broadcast %cst_18 : f32 to vector<8x1xf32>
    %28 = arith.divf %26, %27 : vector<8x1xf32>
    %cst_19 = arith.constant 9.99999974E-6 : f32
    %29 = vector.broadcast %cst_19 : f32 to vector<8x1xf32>
    %30 = arith.addf %28, %29 : vector<8x1xf32>
    %31 = math.rsqrt %30 : vector<8x1xf32>
    %32 = vector.broadcast %31 : vector<8x1xf32> to vector<8x32xf32>
    %33 = arith.mulf %23, %32 : vector<8x32xf32>
    %34 = vector.broadcast %16 : vector<1x32xf32> to vector<8x32xf32>
    %35 = arith.mulf %33, %34 : vector<8x32xf32>
    %36 = vector.broadcast %17 : vector<1x32xf32> to vector<8x32xf32>
    %37 = arith.addf %35, %36 : vector<8x32xf32>
    %c0_20 = arith.constant 0 : index
    %c0_21 = arith.constant 0 : index
    %38 = vector.load %arg8[%c0_20, %c0_21] : memref<8x32xf32, #tpu.memory_space<vmem>>, vector<8x32xf32>
    tpu.vector_store %arg8[%c0_20, %c0_21], %37 {strides = array<i32>} : memref<8x32xf32, #tpu.memory_space<vmem>>, vector<8x32xf32>,
    return
  }
  func.func @transform_0(%arg0: i32) -> (i32, i32) {
    %c0_i32 = arith.constant 0 : i32
    %c0_i32_0 = arith.constant 0 : i32
    return %arg0, %c0_i32 : i32, i32
  }
  func.func @transform_1(%arg0: i32) -> (i32, i32) {
    %c0_i32 = arith.constant 0 : i32
    %c0_i32_0 = arith.constant 0 : i32
    %c0_i32_1 = arith.constant 0 : i32
    return %c0_i32, %c0_i32_0 : i32, i32
  }
  func.func @transform_2(%arg0: i32) -> (i32, i32) {
    %c0_i32 = arith.constant 0 : i32
    %c0_i32_0 = arith.constant 0 : i32
    %c0_i32_1 = arith.constant 0 : i32
    return %c0_i32, %c0_i32_0 : i32, i32
  }
  func.func @transform_3(%arg0: i32) -> (i32, i32) {
    %c0_i32 = arith.constant 0 : i32
    %c0_i32_0 = arith.constant 0 : i32
    %c0_i32_1 = arith.constant 0 : i32
    return %c0_i32, %c0_i32_0 : i32, i32
  }
  func.func @transform_4(%arg0: i32) -> (i32, i32) {
    %c0_i32 = arith.constant 0 : i32
    %c0_i32_0 = arith.constant 0 : i32
    %c0_i32_1 = arith.constant 0 : i32
    return %c0_i32, %c0_i32_0 : i32, i32
  }
  func.func @transform_5(%arg0: i32) -> (i32, i32) {
    %c0_i32 = arith.constant 0 : i32
    %c0_i32_0 = arith.constant 0 : i32
    %c0_i32_1 = arith.constant 0 : i32
    return %c0_i32, %c0_i32_0 : i32, i32
  }
  func.func @transform_6(%arg0: i32) -> (i32, i32) {
    %c0_i32 = arith.constant 0 : i32
    %c0_i32_0 = arith.constant 0 : i32
    %c0_i32_1 = arith.constant 0 : i32
    return %c0_i32, %c0_i32_0 : i32, i32
  }
  func.func @transform_7(%arg0: i32) -> (i32, i32) {
    %c0_i32 = arith.constant 0 : i32
    %c0_i32_0 = arith.constant 0 : i32
    return %arg0, %c0_i32 : i32, i32
  }
}

module attributes {stable_mosaic.version = 11 : i64} {
  func.func @_attn_block_kernel(%arg0: i32, %arg1: memref<1x8x32xf32, #tpu.memory_space<vmem>>, %arg2: memref<1x8x32xf32, #tpu.memory_space<vmem>>, %arg3: memref<32x64xbf16, #tpu.memory_space<vmem>>, %arg4: memref<1x64xf32, #tpu.memory_space<vmem>>, %arg5: memref<32x32xbf16, #tpu.memory_space<vmem>>, %arg6: memref<1x32xf32, #tpu.memory_space<vmem>>, %arg7: memref<32x32xbf16, #tpu.memory_space<vmem>>, %arg8: memref<1x32xf32, #tpu.memory_space<vmem>>, %arg9: memref<1x32xf32, #tpu.memory_space<vmem>>, %arg10: memref<1x32xf32, #tpu.memory_space<vmem>>, %arg11: memref<1x8x32xf32, #tpu.memory_space<vmem>>) attributes {dimension_semantics = [#tpu.dimension_semantics<parallel>], iteration_bounds = array<i64: 2>, scalar_prefetch = 0 : i64, scratch_operands = 0 : i64, tpu.core_type = #tpu.core_type<tc>, window_params = [{transform_indices = @transform_0, window_bounds = array<i64: 1, 8, 32>}, {transform_indices = @transform_1, window_bounds = array<i64: 1, 8, 32>}, {pipeline_mode = #tpu.pipeline_mode<synchronous>, transform_indices = @transform_2, window_bounds = array<i64: 32, 64>}, {pipeline_mode = #tpu.pipeline_mode<synchronous>, transform_indices = @transform_3, window_bounds = array<i64: 1, 64>}, {pipeline_mode = #tpu.pipeline_mode<synchronous>, transform_indices = @transform_4, window_bounds = array<i64: 32, 32>}, {pipeline_mode = #tpu.pipeline_mode<synchronous>, transform_indices = @transform_5, window_bounds = array<i64: 1, 32>}, {pipeline_mode = #tpu.pipeline_mode<synchronous>, transform_indices = @transform_6, window_bounds = array<i64: 32, 32>}, {pipeline_mode = #tpu.pipeline_mode<synchronous>, transform_indices = @transform_7, window_bounds = array<i64: 1, 32>}, {pipeline_mode = #tpu.pipeline_mode<synchronous>, transform_indices = @transform_8, window_bounds = array<i64: 1, 32>}, {pipeline_mode = #tpu.pipeline_mode<synchronous>, transform_indices = @transform_9, window_bounds = array<i64: 1, 32>}, {transform_indices = @transform_10, window_bounds = array<i64: 1, 8, 32>}]} {
    %c0 = arith.constant 0 : index
    %c0_0 = arith.constant 0 : index
    %c0_1 = arith.constant 0 : index
    %0 = vector.load %arg1[%c0, %c0_0, %c0_1] : memref<1x8x32xf32, #tpu.memory_space<vmem>>, vector<1x8x32xf32>
    %1 = vector.shape_cast %0 : vector<1x8x32xf32> to vector<8x32xf32>
    %c0_2 = arith.constant 0 : index
    %c0_3 = arith.constant 0 : index
    %c0_4 = arith.constant 0 : index
    %2 = vector.load %arg2[%c0_2, %c0_3, %c0_4] : memref<1x8x32xf32, #tpu.memory_space<vmem>>, vector<1x8x32xf32>
    %3 = vector.shape_cast %2 : vector<1x8x32xf32> to vector<8x32xf32>
    %4 = arith.addf %1, %3 : vector<8x32xf32>
    %5 = arith.truncf %4 : vector<8x32xf32> to vector<8x32xbf16>
    %c0_5 = arith.constant 0 : index
    %c0_6 = arith.constant 0 : index
    %6 = vector.load %arg3[%c0_5, %c0_6] : memref<32x64xbf16, #tpu.memory_space<vmem>>, vector<32x64xbf16>
    %cst = arith.constant dense<0.000000e+00> : vector<8x64xf32>
    %7 = tpu.matmul %5, %6, %cst {dimension_numbers = #tpu.dot_dimension_numbers<[1], [0], [0], [1], [0, 0, 1, 1], [], []>} : vector<8x32xbf16>, vector<32x64xbf16>, vector<8x64xf32> -> vector<8x64xf32>
    %c0_7 = arith.constant 0 : index
    %c0_8 = arith.constant 0 : index
    %8 = vector.load %arg4[%c0_7, %c0_8] : memref<1x64xf32, #tpu.memory_space<vmem>>, vector<1x64xf32>
    %9 = vector.broadcast %8 : vector<1x64xf32> to vector<8x64xf32>
    %10 = arith.addf %7, %9 : vector<8x64xf32>
    %11 = arith.truncf %1 : vector<8x32xf32> to vector<8x32xbf16>
    %c0_9 = arith.constant 0 : index
    %c0_10 = arith.constant 0 : index
    %12 = vector.load %arg5[%c0_9, %c0_10] : memref<32x32xbf16, #tpu.memory_space<vmem>>, vector<32x32xbf16>
    %cst_11 = arith.constant dense<0.000000e+00> : vector<8x32xf32>
    %13 = tpu.matmul %11, %12, %cst_11 {dimension_numbers = #tpu.dot_dimension_numbers<[1], [0], [0], [1], [0, 0, 1, 1], [], []>} : vector<8x32xbf16>, vector<32x32xbf16>, vector<8x32xf32> -> vector<8x32xf32>
    %c0_12 = arith.constant 0 : index
    %c0_13 = arith.constant 0 : index
    %14 = vector.load %arg6[%c0_12, %c0_13] : memref<1x32xf32, #tpu.memory_space<vmem>>, vector<1x32xf32>
    %15 = vector.broadcast %14 : vector<1x32xf32> to vector<8x32xf32>
    %16 = arith.addf %13, %15 : vector<8x32xf32>
    %17 = vector.extract_strided_slice %10 {offsets = [0, 0], sizes = [8, 32], strides = [1, 1]} : vector<8x64xf32> to vector<8x32xf32>
    %18 = vector.extract_strided_slice %10 {offsets = [0, 32], sizes = [8, 32], strides = [1, 1]} : vector<8x64xf32> to vector<8x32xf32>
    %19 = vector.extract_strided_slice %17 {offsets = [0, 0], sizes = [8, 8], strides = [1, 1]} : vector<8x32xf32> to vector<8x8xf32>
    %20 = vector.extract_strided_slice %18 {offsets = [0, 0], sizes = [8, 8], strides = [1, 1]} : vector<8x32xf32> to vector<8x8xf32>
    %21 = vector.extract_strided_slice %16 {offsets = [0, 0], sizes = [8, 8], strides = [1, 1]} : vector<8x32xf32> to vector<8x8xf32>
    %22 = arith.truncf %19 : vector<8x8xf32> to vector<8x8xbf16>
    %23 = arith.truncf %20 : vector<8x8xf32> to vector<8x8xbf16>
    %cst_14 = arith.constant dense<0.000000e+00> : vector<8x8xf32>
    %24 = tpu.matmul %22, %23, %cst_14 {dimension_numbers = #tpu.dot_dimension_numbers<[1], [1], [0], [0], [0, 0, 1, 0], [], []>} : vector<8x8xbf16>, vector<8x8xbf16>, vector<8x8xf32> -> vector<8x8xf32>
    %cst_15 = arith.constant dense<0xFF800000> : vector<8xf32>
    %25 = vector.multi_reduction <maximumf>, %24, %cst_15 [1] : vector<8x8xf32> to vector<8xf32>
    %26 = vector.shape_cast %25 : vector<8xf32> to vector<8x1xf32>
    %27 = vector.broadcast %26 : vector<8x1xf32> to vector<8x8xf32>
    %28 = arith.subf %24, %27 : vector<8x8xf32>
    %29 = math.exp %28 : vector<8x8xf32>
    %cst_16 = arith.constant dense<0.000000e+00> : vector<8xf32>
    %30 = vector.multi_reduction <add>, %29, %cst_16 [1] : vector<8x8xf32> to vector<8xf32>
    %31 = vector.shape_cast %30 : vector<8xf32> to vector<8x1xf32>
    %32 = arith.truncf %29 : vector<8x8xf32> to vector<8x8xbf16>
    %33 = arith.truncf %21 : vector<8x8xf32> to vector<8x8xbf16>
    %cst_17 = arith.constant dense<0.000000e+00> : vector<8x8xf32>
    %34 = tpu.matmul %32, %33, %cst_17 {dimension_numbers = #tpu.dot_dimension_numbers<[1], [0], [0], [1], [0, 0, 1, 1], [], []>} : vector<8x8xbf16>, vector<8x8xbf16>, vector<8x8xf32> -> vector<8x8xf32>
    %35 = tpu.reciprocal %31 {approx = true} : vector<8x1xf32> -> vector<8x1xf32>
    %36 = vector.broadcast %35 : vector<8x1xf32> to vector<8x8xf32>
    %37 = arith.mulf %34, %36 : vector<8x8xf32>
    %38 = vector.extract_strided_slice %17 {offsets = [0, 8], sizes = [8, 8], strides = [1, 1]} : vector<8x32xf32> to vector<8x8xf32>
    %39 = vector.extract_strided_slice %18 {offsets = [0, 8], sizes = [8, 8], strides = [1, 1]} : vector<8x32xf32> to vector<8x8xf32>
    %40 = vector.extract_strided_slice %16 {offsets = [0, 8], sizes = [8, 8], strides = [1, 1]} : vector<8x32xf32> to vector<8x8xf32>
    %41 = arith.truncf %38 : vector<8x8xf32> to vector<8x8xbf16>
    %42 = arith.truncf %39 : vector<8x8xf32> to vector<8x8xbf16>
    %cst_18 = arith.constant dense<0.000000e+00> : vector<8x8xf32>
    %43 = tpu.matmul %41, %42, %cst_18 {dimension_numbers = #tpu.dot_dimension_numbers<[1], [1], [0], [0], [0, 0, 1, 0], [], []>} : vector<8x8xbf16>, vector<8x8xbf16>, vector<8x8xf32> -> vector<8x8xf32>
    %cst_19 = arith.constant dense<0xFF800000> : vector<8xf32>
    %44 = vector.multi_reduction <maximumf>, %43, %cst_19 [1] : vector<8x8xf32> to vector<8xf32>
    %45 = vector.shape_cast %44 : vector<8xf32> to vector<8x1xf32>
    %46 = vector.broadcast %45 : vector<8x1xf32> to vector<8x8xf32>
    %47 = arith.subf %43, %46 : vector<8x8xf32>
    %48 = math.exp %47 : vector<8x8xf32>
    %cst_20 = arith.constant dense<0.000000e+00> : vector<8xf32>
    %49 = vector.multi_reduction <add>, %48, %cst_20 [1] : vector<8x8xf32> to vector<8xf32>
    %50 = vector.shape_cast %49 : vector<8xf32> to vector<8x1xf32>
    %51 = arith.truncf %48 : vector<8x8xf32> to vector<8x8xbf16>
    %52 = arith.truncf %40 : vector<8x8xf32> to vector<8x8xbf16>
    %cst_21 = arith.constant dense<0.000000e+00> : vector<8x8xf32>
    %53 = tpu.matmul %51, %52, %cst_21 {dimension_numbers = #tpu.dot_dimension_numbers<[1], [0], [0], [1], [0, 0, 1, 1], [], []>} : vector<8x8xbf16>, vector<8x8xbf16>, vector<8x8xf32> -> vector<8x8xf32>
    %54 = tpu.reciprocal %50 {approx = true} : vector<8x1xf32> -> vector<8x1xf32>
    %55 = vector.broadcast %54 : vector<8x1xf32> to vector<8x8xf32>
    %56 = arith.mulf %53, %55 : vector<8x8xf32>
    %57 = vector.extract_strided_slice %17 {offsets = [0, 16], sizes = [8, 8], strides = [1, 1]} : vector<8x32xf32> to vector<8x8xf32>
    %58 = vector.extract_strided_slice %18 {offsets = [0, 16], sizes = [8, 8], strides = [1, 1]} : vector<8x32xf32> to vector<8x8xf32>
    %59 = vector.extract_strided_slice %16 {offsets = [0, 16], sizes = [8, 8], strides = [1, 1]} : vector<8x32xf32> to vector<8x8xf32>
    %60 = arith.truncf %57 : vector<8x8xf32> to vector<8x8xbf16>
    %61 = arith.truncf %58 : vector<8x8xf32> to vector<8x8xbf16>
    %cst_22 = arith.constant dense<0.000000e+00> : vector<8x8xf32>
    %62 = tpu.matmul %60, %61, %cst_22 {dimension_numbers = #tpu.dot_dimension_numbers<[1], [1], [0], [0], [0, 0, 1, 0], [], []>} : vector<8x8xbf16>, vector<8x8xbf16>, vector<8x8xf32> -> vector<8x8xf32>
    %cst_23 = arith.constant dense<0xFF800000> : vector<8xf32>
    %63 = vector.multi_reduction <maximumf>, %62, %cst_23 [1] : vector<8x8xf32> to vector<8xf32>
    %64 = vector.shape_cast %63 : vector<8xf32> to vector<8x1xf32>
    %65 = vector.broadcast %64 : vector<8x1xf32> to vector<8x8xf32>
    %66 = arith.subf %62, %65 : vector<8x8xf32>
    %67 = math.exp %66 : vector<8x8xf32>
    %cst_24 = arith.constant dense<0.000000e+00> : vector<8xf32>
    %68 = vector.multi_reduction <add>, %67, %cst_24 [1] : vector<8x8xf32> to vector<8xf32>
    %69 = vector.shape_cast %68 : vector<8xf32> to vector<8x1xf32>
    %70 = arith.truncf %67 : vector<8x8xf32> to vector<8x8xbf16>
    %71 = arith.truncf %59 : vector<8x8xf32> to vector<8x8xbf16>
    %cst_25 = arith.constant dense<0.000000e+00> : vector<8x8xf32>
    %72 = tpu.matmul %70, %71, %cst_25 {dimension_numbers = #tpu.dot_dimension_numbers<[1], [0], [0], [1], [0, 0, 1, 1], [], []>} : vector<8x8xbf16>, vector<8x8xbf16>, vector<8x8xf32> -> vector<8x8xf32>
    %73 = tpu.reciprocal %69 {approx = true} : vector<8x1xf32> -> vector<8x1xf32>
    %74 = vector.broadcast %73 : vector<8x1xf32> to vector<8x8xf32>
    %75 = arith.mulf %72, %74 : vector<8x8xf32>
    %76 = vector.extract_strided_slice %17 {offsets = [0, 24], sizes = [8, 8], strides = [1, 1]} : vector<8x32xf32> to vector<8x8xf32>
    %77 = vector.extract_strided_slice %18 {offsets = [0, 24], sizes = [8, 8], strides = [1, 1]} : vector<8x32xf32> to vector<8x8xf32>
    %78 = vector.extract_strided_slice %16 {offsets = [0, 24], sizes = [8, 8], strides = [1, 1]} : vector<8x32xf32> to vector<8x8xf32>
    %79 = arith.truncf %76 : vector<8x8xf32> to vector<8x8xbf16>
    %80 = arith.truncf %77 : vector<8x8xf32> to vector<8x8xbf16>
    %cst_26 = arith.constant dense<0.000000e+00> : vector<8x8xf32>
    %81 = tpu.matmul %79, %80, %cst_26 {dimension_numbers = #tpu.dot_dimension_numbers<[1], [1], [0], [0], [0, 0, 1, 0], [], []>} : vector<8x8xbf16>, vector<8x8xbf16>, vector<8x8xf32> -> vector<8x8xf32>
    %cst_27 = arith.constant dense<0xFF800000> : vector<8xf32>
    %82 = vector.multi_reduction <maximumf>, %81, %cst_27 [1] : vector<8x8xf32> to vector<8xf32>
    %83 = vector.shape_cast %82 : vector<8xf32> to vector<8x1xf32>
    %84 = vector.broadcast %83 : vector<8x1xf32> to vector<8x8xf32>
    %85 = arith.subf %81, %84 : vector<8x8xf32>
    %86 = math.exp %85 : vector<8x8xf32>
    %cst_28 = arith.constant dense<0.000000e+00> : vector<8xf32>
    %87 = vector.multi_reduction <add>, %86, %cst_28 [1] : vector<8x8xf32> to vector<8xf32>
    %88 = vector.shape_cast %87 : vector<8xf32> to vector<8x1xf32>
    %89 = arith.truncf %86 : vector<8x8xf32> to vector<8x8xbf16>
    %90 = arith.truncf %78 : vector<8x8xf32> to vector<8x8xbf16>
    %cst_29 = arith.constant dense<0.000000e+00> : vector<8x8xf32>
    %91 = tpu.matmul %89, %90, %cst_29 {dimension_numbers = #tpu.dot_dimension_numbers<[1], [0], [0], [1], [0, 0, 1, 1], [], []>} : vector<8x8xbf16>, vector<8x8xbf16>, vector<8x8xf32> -> vector<8x8xf32>
    %92 = tpu.reciprocal %88 {approx = true} : vector<8x1xf32> -> vector<8x1xf32>
    %93 = vector.broadcast %92 : vector<8x1xf32> to vector<8x8xf32>
    %94 = arith.mulf %91, %93 : vector<8x8xf32>
    %95 = tpu.concatenate %37, %56, %75, %94 in 1 : vector<8x8xf32>, vector<8x8xf32>, vector<8x8xf32>, vector<8x8xf32> -> vector<8x32xf32>
    %96 = arith.truncf %95 : vector<8x32xf32> to vector<8x32xbf16>
    %c0_30 = arith.constant 0 : index
    %c0_31 = arith.constant 0 : index
    %97 = vector.load %arg7[%c0_30, %c0_31] : memref<32x32xbf16, #tpu.memory_space<vmem>>, vector<32x32xbf16>
    %cst_32 = arith.constant dense<0.000000e+00> : vector<8x32xf32>
    %98 = tpu.matmul %96, %97, %cst_32 {dimension_numbers = #tpu.dot_dimension_numbers<[1], [0], [0], [1], [0, 0, 1, 1], [], []>} : vector<8x32xbf16>, vector<32x32xbf16>, vector<8x32xf32> -> vector<8x32xf32>
    %c0_33 = arith.constant 0 : index
    %c0_34 = arith.constant 0 : index
    %99 = vector.load %arg8[%c0_33, %c0_34] : memref<1x32xf32, #tpu.memory_space<vmem>>, vector<1x32xf32>
    %100 = vector.broadcast %99 : vector<1x32xf32> to vector<8x32xf32>
    %101 = arith.addf %98, %100 : vector<8x32xf32>
    %102 = arith.addf %101, %1 : vector<8x32xf32>
    %c0_35 = arith.constant 0 : index
    %c0_36 = arith.constant 0 : index
    %103 = vector.load %arg9[%c0_35, %c0_36] : memref<1x32xf32, #tpu.memory_space<vmem>>, vector<1x32xf32>
    %c0_37 = arith.constant 0 : index
    %c0_38 = arith.constant 0 : index
    %104 = vector.load %arg10[%c0_37, %c0_38] : memref<1x32xf32, #tpu.memory_space<vmem>>, vector<1x32xf32>
    %cst_39 = arith.constant dense<0.000000e+00> : vector<8xf32>
    %105 = vector.multi_reduction <add>, %102, %cst_39 [1] : vector<8x32xf32> to vector<8xf32>
    %106 = vector.shape_cast %105 : vector<8xf32> to vector<8x1xf32>
    %cst_40 = arith.constant 3.200000e+01 : f32
    %107 = vector.broadcast %cst_40 : f32 to vector<8x1xf32>
    %108 = arith.divf %106, %107 : vector<8x1xf32>
    %109 = vector.broadcast %108 : vector<8x1xf32> to vector<8x32xf32>
    %110 = arith.subf %102, %109 : vector<8x32xf32>
    %111 = arith.mulf %110, %110 : vector<8x32xf32>
    %cst_41 = arith.constant dense<0.000000e+00> : vector<8xf32>
    %112 = vector.multi_reduction <add>, %111, %cst_41 [1] : vector<8x32xf32> to vector<8xf32>
    %113 = vector.shape_cast %112 : vector<8xf32> to vector<8x1xf32>
    %cst_42 = arith.constant 3.200000e+01 : f32
    %114 = vector.broadcast %cst_42 : f32 to vector<8x1xf32>
    %115 = arith.divf %113, %114 : vector<8x1xf32>
    %cst_43 = arith.constant 9.99999974E-6 : f32
    %116 = vector.broadcast %cst_43 : f32 to vector<8x1xf32>
    %117 = arith.addf %115, %116 : vector<8x1xf32>
    %118 = math.rsqrt %117 : vector<8x1xf32>
    %119 = vector.broadcast %118 : vector<8x1xf32> to vector<8x32xf32>
    %120 = arith.mulf %110, %119 : vector<8x32xf32>
    %121 = vector.broadcast %103 : vector<1x32xf32> to vector<8x32xf32>
    %122 = arith.mulf %120, %121 : vector<8x32xf32>
    %123 = vector.broadcast %104 : vector<1x32xf32> to vector<8x32xf32>
    %124 = arith.addf %122, %123 : vector<8x32xf32>
    %c0_44 = arith.constant 0 : index
    %c0_45 = arith.constant 0 : index
    %c0_46 = arith.constant 0 : index
    %125 = vector.load %arg11[%c0_44, %c0_45, %c0_46] : memref<1x8x32xf32, #tpu.memory_space<vmem>>, vector<1x8x32xf32>
    %126 = vector.shape_cast %125 : vector<1x8x32xf32> to vector<8x32xf32>
    %127 = vector.shape_cast %124 : vector<8x32xf32> to vector<1x8x32xf32>
    tpu.vector_store %arg11[%c0_44, %c0_45, %c0_46], %127 {strides = array<i32>} : memref<1x8x32xf32, #tpu.memory_space<vmem>>, vector<1x8x32xf32>,
    return
  }
  func.func @transform_0(%arg0: i32) -> (i32, i32, i32) {
    %c0_i32 = arith.constant 0 : i32
    %c0_i32_0 = arith.constant 0 : i32
    %c0_i32_1 = arith.constant 0 : i32
    return %arg0, %c0_i32, %c0_i32_0 : i32, i32, i32
  }
  func.func @transform_1(%arg0: i32) -> (i32, i32, i32) {
    %c0_i32 = arith.constant 0 : i32
    %c0_i32_0 = arith.constant 0 : i32
    %c0_i32_1 = arith.constant 0 : i32
    return %arg0, %c0_i32, %c0_i32_0 : i32, i32, i32
  }
  func.func @transform_2(%arg0: i32) -> (i32, i32) {
    %c0_i32 = arith.constant 0 : i32
    %c0_i32_0 = arith.constant 0 : i32
    %c0_i32_1 = arith.constant 0 : i32
    return %c0_i32, %c0_i32_0 : i32, i32
  }
  func.func @transform_3(%arg0: i32) -> (i32, i32) {
    %c0_i32 = arith.constant 0 : i32
    %c0_i32_0 = arith.constant 0 : i32
    %c0_i32_1 = arith.constant 0 : i32
    return %c0_i32, %c0_i32_0 : i32, i32
  }
  func.func @transform_4(%arg0: i32) -> (i32, i32) {
    %c0_i32 = arith.constant 0 : i32
    %c0_i32_0 = arith.constant 0 : i32
    %c0_i32_1 = arith.constant 0 : i32
    return %c0_i32, %c0_i32_0 : i32, i32
  }
  func.func @transform_5(%arg0: i32) -> (i32, i32) {
    %c0_i32 = arith.constant 0 : i32
    %c0_i32_0 = arith.constant 0 : i32
    %c0_i32_1 = arith.constant 0 : i32
    return %c0_i32, %c0_i32_0 : i32, i32
  }
  func.func @transform_6(%arg0: i32) -> (i32, i32) {
    %c0_i32 = arith.constant 0 : i32
    %c0_i32_0 = arith.constant 0 : i32
    %c0_i32_1 = arith.constant 0 : i32
    return %c0_i32, %c0_i32_0 : i32, i32
  }
  func.func @transform_7(%arg0: i32) -> (i32, i32) {
    %c0_i32 = arith.constant 0 : i32
    %c0_i32_0 = arith.constant 0 : i32
    %c0_i32_1 = arith.constant 0 : i32
    return %c0_i32, %c0_i32_0 : i32, i32
  }
  func.func @transform_8(%arg0: i32) -> (i32, i32) {
    %c0_i32 = arith.constant 0 : i32
    %c0_i32_0 = arith.constant 0 : i32
    %c0_i32_1 = arith.constant 0 : i32
    return %c0_i32, %c0_i32_0 : i32, i32
  }
  func.func @transform_9(%arg0: i32) -> (i32, i32) {
    %c0_i32 = arith.constant 0 : i32
    %c0_i32_0 = arith.constant 0 : i32
    %c0_i32_1 = arith.constant 0 : i32
    return %c0_i32, %c0_i32_0 : i32, i32
  }
  func.func @transform_10(%arg0: i32) -> (i32, i32, i32) {
    %c0_i32 = arith.constant 0 : i32
    %c0_i32_0 = arith.constant 0 : i32
    %c0_i32_1 = arith.constant 0 : i32
    return %arg0, %c0_i32, %c0_i32_0 : i32, i32, i32
  }
}

</mosaic_0001>

<bundles_post_ra>
// kernel: transformer_encoder_layer.3
= control target key start
LH: loop header
LB: loop body
LE: loop exit
PB: predicated region body
PF: predicated region fallthrough
CT: control target
= control target key end

     0   :  { %s631_s24 = smov 0   ;;  %s689_s0 = inlined_call_operand.vmem [shape: f32[16,32], index: 0, kind: input, shape index: {}]   ;;  %s690_s1 = inlined_call_operand.vmem [shape: bf16[32,64], index: 1, kind: input, shape index: {}]   ;;  %s691_s2 = inlined_call_operand.vmem [shape: f32[1,64], index: 2, kind: input, shape index: {}]   ;;  %s692_s3 = inlined_call_operand.vmem [shape: bf16[64,32], index: 3, kind: input, shape index: {}]   ;;  %s693_s4 = inlined_call_operand.vmem [shape: f32[1,32], index: 4, kind: input, shape index: {}]   ;;  %s694_s5 = inlined_call_operand.vmem [shape: f32[1,32], index: 5, kind: input, shape index: {}]   ;;  %s695_s6 = inlined_call_operand.vmem [shape: f32[1,32], index: 6, kind: input, shape index: {}]   ;;  %s696_s7 = inlined_call_operand.vmem [shape: f32[16,32], index: 7, kind: output, shape index: {}]  }
   0x1 LB: > { %s514_s25 = sadd.s32 4294967295, %s587_s24   ;;  %p518_p0 = scmp.ge.s32.totalorder %s587_s24, 1  ;;  %s587_s24 = sphi %s631_s24, %s17_s24  }
   0x2   : > { %p236_p1 = scmp.lt.s32.totalorder %s587_s24, 3 }
   0x4   : > { %p237_p2 = pnand %p518_p0, %p236_p1 }
   0x5   : > { %v573_v0 = vld [vmem:[%s690_s1] sm:$0xff] (!%p237_p2)   ;;  %v589_v1 = vmov (!%p237_p2), 0.0   ;;  %v574_v2 = vld [vmem:[%s690_s1 + $0x8] sm:$0xff] (!%p237_p2)   ;;  %vm590_vm0 = vmmov (!%p237_p2), 0   ;;  %p266_p3 = scmp.lt.s32.totalorder (!%p237_p2), %s514_s25, 1  ;;  %vm300_vm1 = vcmask (!%p237_p2), 261120  }
   0x6   : > { %240 = sbr.rel (%p237_p2) target bundleno = 767 (0x2ff), region = 48  ;;  %543 = vmatprep.subr.bf16.mxu0 (!%p237_p2), %v589_v1  ;;  %551 = vmatprep.subr.bf16.mxu1 (!%p237_p2), %v589_v1  ;;  %v575_v3 = vld [vmem:[%s692_s3] sm:$0xff] (!%p237_p2)   ;;  %v576_v4 = vld [vmem:[%s692_s3 + $0x8] sm:$0xff] (!%p237_p2)   ;;  %v577_v7 = vld [vmem:[%s692_s3 + $0x10] sm:$0xff] (!%p237_p2)   ;;  %vm385_vm2 = vcmask (!%p237_p2), 523264  }
   0x7   : > { %544 = vmatpush3.bf16.msra.mxu0 (!%p237_p2), %v573_v0  ;;  %547 = vmatprep.mubr.msk.bf16.mxu0 (!%p237_p2), %vm590_vm0, %v589_v1  ;;  %v578_v8 = vld [vmem:[%s692_s3 + $0x18] sm:$0xff] (!%p237_p2)   ;;  %v521_v9 = vld [vmem:[%s691_s2] ss:$0 sm:$0xff] (!%p237_p2) }
   0x8   : > { %545 = vmatprep.subr.bf16.mxu0 (!%p237_p2), %v589_v1  ;;  %559 = vmatprep.mubr.msk.bf16.mxu1 (!%p237_p2), %vm590_vm0, %v589_v1  ;;  %v525_v17 = vld [vmem:[%s693_s4] ss:$0 sm:$0xff] (!%p237_p2) }
   0x9   : > { %552 = vmatpush3.bf16.msra.mxu1 (!%p237_p2), %v575_v3  ;;  %v531_v34 = vld [vmem:[%s694_s5] ss:$0 sm:$0xff] (!%p237_p2) }
   0xa   : > { %553 = vmatprep.subr.bf16.mxu1 (!%p237_p2), %v589_v1  ;;  %v532_v36 = vld [vmem:[%s695_s6] ss:$0 sm:$0xff] (!%p237_p2) }
   0xb   : > { %546 = vmatpush3.bf16.msra.mxu0 (!%p237_p2), %v574_v2 }
   0xd   : > { %s698_s25 = smov (!%p266_p3, %s514_s25), 1  ;;  %554 = vmatpush3.bf16.msra.mxu1 %v576_v4 }
   0xe   : > { %s519_s11 = sshll.u32 %s698_s25, 3  ;;  %555 = vmatprep.subr.bf16.mxu1 %v589_v1 }
   0xf   : > { %s269_s14 = scalar_lea.vmem %s689_s0, %s519_s11  ;;  %s273_s8 = scalar_lea.vmem %s696_s7, %s519_s11 }
  0x10   : > { %v275_v5 = vld [vmem:[%s269_s14] sm:$0xff] }
  0x11   : > { %v276_v6 = vpack.c.bf16 %v275_v5, %v275_v5  ;;  %556 = vmatpush3.bf16.msra.mxu1 %v577_v7 }
  0x12   : > { %557 = vmatprep.subr.bf16.mxu1 %v589_v1 }
  0x13   : > { %548 = vmatmul.mubr.msk.bf16.vlgmr.msra.gmra.mrb[0].mxu0 %vm300_vm1, %v276_v6 }
  0x15   : > { %558 = vmatpush3.bf16.msra.mxu1 %v578_v8 }
  0xe6   : > { %v338_v10 = vpop.f32.mrb[0].mxu0 }
  0xe7   : > { %v339_v11 = vadd.f32 %v521_v9, %v338_v10  ;;  %v549_v12 = vpop.f32.mrb[1].mxu0 }
  0xe8   : > { %v341_v13 = vpop.f32.mrb[2].mxu0 }
  0xe9   : > { %v344_v14 = vmax.f32 %v339_v11, 0.0  ;;  %v550_v15 = vpop.f32.mrb[3].mxu0 }
  0xeb   : > { %v345_v16 = vpack.c.bf16 %v344_v14, %v344_v14 }
  0xed   : > { %560 = vmatmul.mubr.msk.bf16.vlgmr.msra.gmra.mrb[0].mxu1 %vm385_vm2, %v345_v16 }
 0x1c0   : > { %v423_v18 = vpop.f32.mrb[0].mxu1 }
 0x1c1   : > { %v424_v19 = vadd.f32 %v525_v17, %v423_v18  ;;  %v561_v20 = vpop.f32.mrb[1].mxu1 }
 0x1c2   : > { %v426_v21 = vpop.f32.mrb[2].mxu1 }
 0x1c3   : > { %v562_v22 = vpop.f32.mrb[3].mxu1  ;;  %v429_v23 = vadd.f32 %v424_v19, %v275_v5 }
 0x1c5   : > { %v432_v24 = vsel %vm300_vm1, %v429_v23, 0.0 }
 0x1c6   : > { %433 = vadd.xlane.f32.xlu0 %v432_v24 }
 0x253   : > { %v434_v25 = vpop.xlane.xlu0 %433 }
 0x254   : > { %v436_v26 = vmul.f32 0.03125, %v434_v25 }
 0x256   : > { %v437_v27 = vsub.f32 %v429_v23, %v436_v26 }
 0x258   : > { %v438_v28 = vmul.f32 %v437_v27, %v437_v27 }
 0x25a   : > { %v439_v29 = vsel %vm300_vm1, %v438_v28, 0.0 }
 0x25b   : > { %440 = vadd.xlane.f32.xlu0 %v439_v29 }
 0x2e8   : > { %v441_v30 = vpop.xlane.xlu0 %440 }
 0x2e9   : > { %v442_v31 = vmul.f32 0.03125, %v441_v30 }
 0x2eb   : > { %v443_v32 = vadd.f32 1e-05, %v442_v31 }
 0x2ed   : > { %579 = vrsqrt.f32 %v443_v32 }
 0x2f7   : > { %v580_v33 = vpop.eup %579 }
 0x2f8   : > { %v445_v35 = vmul.f32 %v580_v33, %v437_v27 }
 0x2fa   : > { %v452_v37 = vmul.f32 %v531_v34, %v445_v35 }
 0x2fc   : > { %v459_v38 = vadd.f32 %v532_v36, %v452_v37 }
 0x2fe   : > { %460 = vst.msk [vmem:[%s273_s8] sm:$0xff] %vm300_vm1, %v459_v38 }
 0x2ff PF: > { %s17_s24 = sadd.s32 1, %s587_s24  }
 0x300   : > { %p14_p4 = scmp.ge.s32.totalorder %s17_s24, 4  }
 0x302   :  { %16 = sbr.rel (!%p14_p4) target bundleno = 1 (0x1), region = 78 }

// kernel: transformer_encoder_layer.2
= control target key start
LH: loop header
LB: loop body
LE: loop exit
PB: predicated region body
PF: predicated region fallthrough
CT: control target
= control target key end

     0   :  { %s1382_s13 = smov 0   ;;  %s1519_s0 = inlined_call_operand.vmem [shape: f32[2,8,32], index: 0, kind: input, shape index: {}]   ;;  %s1520_s1 = inlined_call_operand.vmem [shape: f32[2,8,32], index: 1, kind: input, shape index: {}]   ;;  %s1521_s2 = inlined_call_operand.vmem [shape: bf16[32,64], index: 2, kind: input, shape index: {}]   ;;  %s1522_s3 = inlined_call_operand.vmem [shape: f32[1,64], index: 3, kind: input, shape index: {}]   ;;  %s1523_s4 = inlined_call_operand.vmem [shape: bf16[32,32], index: 4, kind: input, shape index: {}]   ;;  %s1524_s5 = inlined_call_operand.vmem [shape: f32[1,32], index: 5, kind: input, shape index: {}]   ;;  %s1525_s6 = inlined_call_operand.vmem [shape: bf16[32,32], index: 6, kind: input, shape index: {}]   ;;  %s1526_s7 = inlined_call_operand.vmem [shape: f32[1,32], index: 7, kind: input, shape index: {}]   ;;  %s1527_s8 = inlined_call_operand.vmem [shape: f32[1,32], index: 8, kind: input, shape index: {}]   ;;  %s1528_s9 = inlined_call_operand.vmem [shape: f32[1,32], index: 9, kind: input, shape index: {}]   ;;  %s1529_s10 = inlined_call_operand.vmem [shape: f32[2,8,32], index: 10, kind: output, shape index: {}]  }
   0x1 LB: > { %s1134_s14 = sadd.s32 4294967295, %s1313_s13   ;;  %p1138_p0 = scmp.ge.s32.totalorder %s1313_s13, 1  ;;  %s1313_s13 = sphi %s1382_s13, %s20_s13  }
   0x2   : > { %p320_p1 = scmp.lt.s32.totalorder %s1313_s13, 3 }
   0x4   : > { %p321_p2 = pnand %p1138_p0, %p320_p1 }
   0x5   : > { %v1283_v0 = vld [vmem:[%s1521_s2] sm:$0xff] (!%p321_p2)   ;;  %v1315_v1 = vmov (!%p321_p2), 0.0   ;;  %v1284_v2 = vld [vmem:[%s1521_s2 + $0x8] sm:$0xff] (!%p321_p2)   ;;  %vm1316_vm0 = vmmov (!%p321_p2), 0   ;;  %p360_p3 = scmp.lt.s32.totalorder (!%p321_p2), %s1134_s14, 1  ;;  %vm400_vm1 = vcmask (!%p321_p2), 261120  }
   0x6   : > { %324 = sbr.rel (%p321_p2) target bundleno = 1648 (0x670), region = 60  ;;  %1191 = vmatprep.subr.bf16.mxu0 (!%p321_p2), %v1315_v1  ;;  %1199 = vmatprep.subr.bf16.mxu1 (!%p321_p2), %v1315_v1  ;;  %v1142_v7 = vld [vmem:[%s1522_s3] ss:$0 sm:$0xff] (!%p321_p2)  ;;  %s1317_s30 = smov (!%p321_p2), 120   ;;  %v1286_v15 = vld [vmem:[%s1523_s4 + $0x8] sm:$0xff] (!%p321_p2)   ;;  %vm515_vm2 = vcmask (!%p321_p2), 64512  }
   0x7   : > { %1192 = vmatpush3.bf16.msra.mxu0 (!%p321_p2), %v1283_v0  ;;  %1195 = vmatprep.mubr.msk.bf16.mxu0 (!%p321_p2), %vm1316_vm0, %v1315_v1  ;;  %v1285_v12 = vld [vmem:[%s1523_s4] sm:$0xff] (!%p321_p2)   ;;  %s1318_s11 = smov (!%p321_p2), 96   ;;  %s1319_s15 = smov (!%p321_p2), 80   ;;  %vm576_vm3 = vcmask (!%p321_p2), 1043456   ;;  %vm966_vm4 = vcmask (!%p321_p2), 130048   ;;  %vm968_vm5 = vcmask (!%p321_p2), 195584  }
   0x8   : > { %1193 = vmatprep.subr.bf16.mxu0 (!%p321_p2), %v1315_v1  ;;  %1203 = vmatprep.mubr.msk.bf16.mxu1 (!%p321_p2), %vm1316_vm0, %v1315_v1  ;;  %s1320_s16 = smov (!%p321_p2), 88   ;;  %s1321_s17 = smov (!%p321_p2), 72   ;;  %v1146_v28 = vld [vmem:[%s1524_s5] ss:$0 sm:$0xff] (!%p321_p2) }
   0x9   : > { %1200 = vmatpush3.bf16.msra.mxu1 (!%p321_p2), %v1285_v12  ;;  %s1322_s18 = smov (!%p321_p2), 112   ;;  %s1323_s20 = smov (!%p321_p2), 104  }
   0xa   : > { %1201 = vmatprep.subr.bf16.mxu1 (!%p321_p2), %v1315_v1  ;;  %s1325_s26 = smov (!%p321_p2), 16   ;;  %s1326_s29 = smov (!%p321_p2), 24  }
   0xb   : > { %1194 = vmatpush3.bf16.msra.mxu0 (!%p321_p2), %v1284_v2 }
   0xc   : > { %1207 = vmatprep.subr.bf16.mxu0 (!%p321_p2), %v1315_v1 }
   0xd   : > { %s1531_s14 = smov (!%p360_p3, %s1134_s14), 1  ;;  %1202 = vmatpush3.bf16.msra.mxu1 %v1286_v15 }
   0xe   : > { %s1403_s19 = sshll.u32 %s1531_s14, 3  ;;  %1213 = vmatprep.subr.bf16.mxu1 %v1315_v1 }
   0xf   : > { %s363_s22 = scalar_lea.vmem %s1519_s0, %s1403_s19  ;;  %s367_s25 = scalar_lea.vmem %s1520_s1, %s1403_s19 }
  0x10   : > { %v1414_v3 = vld [vmem:[%s363_s22] sm:$0xff] }
  0x11   : > { %v374_v4 = vld [vmem:[%s367_s25] sm:$0xff]  ;;  %v444_v16 = vpack.c.bf16 %v1414_v3, %v1414_v3  ;;  %s1324_s25 = smov 8  }
  0x12   : > { %v375_v5 = vadd.f32 %v374_v4, %v1414_v3 }
  0x13   : > { %1204 = vmatmul.mubr.msk.bf16.vlgmr.msra.gmra.mrb[0].mxu1 %vm400_vm1, %v444_v16 }
  0x14   : > { %v376_v6 = vpack.c.bf16 %v375_v5, %v375_v5  ;;  %1215 = vmatprep.mubr.msk.bf16.mxu1 %vm1316_vm0, %v1315_v1 }
  0x16   : > { %1196 = vmatmul.mubr.msk.bf16.vlgmr.msra.gmra.mrb[0].mxu0 %vm400_vm1, %v376_v6 }
  0x17   : > { %1209 = vmatprep.mubr.msk.bf16.mxu0 %vm1316_vm0, %v1315_v1 }
  0xe6   : > { %v505_v29 = vpop.f32.mrb[0].mxu1 }
  0xe7   : > { %v506_v30 = vadd.f32 %v1146_v28, %v505_v29  ;;  %v1205_v31 = vpop.f32.mrb[1].mxu1 }
  0xe8   : > { %v508_v32 = vpop.f32.mrb[2].mxu1 }
  0xe9   : > { %v438_v8 = vpop.f32.mrb[0].mxu0  ;;  %v1206_v33 = vpop.f32.mrb[3].mxu1  ;;  %v572_v34 = vpack.c.bf16 %v506_v30, %v506_v30  ;;  %v1287_v30 = vld [vmem:[%s1525_s6] sm:$0xff]  }
  0xea   : > { %v439_v9 = vadd.f32 %v1142_v7, %v438_v8  ;;  %v1197_v10 = vpop.f32.mrb[1].mxu0 }
  0xeb   : > { %v441_v11 = vpop.f32.mrb[2].mxu0  ;;  %v578_v35 = vsel %vm576_vm3, %v572_v34, 0 }
  0xec   : > { %v511_v13 = vpack.c.bf16 %v439_v9, %v439_v9  ;;  %v1198_v14 = vpop.f32.mrb[3].mxu0  ;;  %1214 = vmatpush3.bf16.msra.mxu1 %v578_v35 }
  0xed   : > { %1225 = vmatprep.subr.bf16.mxu1 %v1315_v1 }
  0xee   : > { %622 = vrot.lane.b32.xlu1 %v511_v13, %s1317_s30  ;;  %513 = vrot.lane.b32.xlu0 %v511_v13, %s1318_s11 }
  0xf2   : > { %735 = vrot.lane.b32.xlu1 %v511_v13, %s1319_s15  ;;  %624 = vrot.lane.b32.xlu0 %v511_v13, %s1320_s16 }
  0xf6   : > { %845 = vrot.lane.b32.xlu1 %v511_v13, %s1321_s17  ;;  %733 = vrot.lane.b32.xlu0 %v511_v13, %s1322_s18 }
  0xfa   : > { %843 = vrot.lane.b32.xlu0 %v511_v13, %s1323_s20 }
 0x160   : > { %v514_v17 = vpop.permute.xlu0 %513  ;;  %v623_v20 = vpop.permute.xlu1 %622 }
 0x161   : > { %v520_v18 = vsel %vm515_vm2, %v514_v17, 0 }
 0x162   : > { %1208 = vmatpush3.bf16.xpose.msra.mxu0 %v520_v18 }
 0x163   : > { %1219 = vmatprep.subr.bf16.mxu0 %v1315_v1 }
 0x164   : > { %v625_v19 = vpop.permute.xlu0 %624  ;;  %v736_v22 = vpop.permute.xlu1 %735 }
 0x165   : > { %v630_v21 = vsel %vm515_vm2, %v625_v19, 0  ;;  %v741_v23 = vsel %vm515_vm2, %v736_v22, 0 }
 0x168   : > { %v846_v24 = vpop.permute.xlu1 %845  ;;  %v734_v25 = vpop.permute.xlu0 %733 }
 0x169   : > { %1210 = vmatmul.mubr.msk.bf16.vlgmr.msra.gmra.mrb[4].mxu0 %vm515_vm2, %v511_v13  ;;  %v851_v26 = vsel %vm515_vm2, %v846_v24, 0 }
 0x16a   : > { %1220 = vmatpush3.bf16.xpose.msra.mxu0 %v630_v21  ;;  %1221 = vmatprep.mubr.msk.bf16.mxu0 %vm1316_vm0, %v1315_v1 }
 0x16b   : > { %1231 = vmatprep.subr.bf16.mxu0 %v1315_v1 }
 0x16c   : > { %v844_v27 = vpop.permute.xlu0 %843 }
 0x171   : > { %1222 = vmatmul.mubr.msk.bf16.vlgmr.msra.gmra.mrb[8].mxu0 %vm515_vm2, %v623_v20 }
 0x172   : > { %1232 = vmatpush3.bf16.xpose.msra.mxu0 %v741_v23  ;;  %1233 = vmatprep.mubr.msk.bf16.mxu0 %vm1316_vm0, %v1315_v1 }
 0x173   : > { %1243 = vmatprep.subr.bf16.mxu0 %v1315_v1 }
 0x179   : > { %1234 = vmatmul.mubr.msk.bf16.vlgmr.msra.gmra.mrb[12].mxu0 %vm515_vm2, %v734_v25 }
 0x17a   : > { %1244 = vmatpush3.bf16.xpose.msra.mxu0 %v851_v26  ;;  %1245 = vmatprep.mubr.msk.bf16.mxu0 %vm1316_vm0, %v1315_v1 }
 0x17b   : > { %1255 = vmatprep.subr.bf16.mxu0 %v1315_v1 }
 0x181   : > { %1246 = vmatmul.mubr.msk.bf16.vlgmr.msra.gmra.mrb[16].mxu0 %vm515_vm2, %v844_v27 }
 0x182   : > { %1259 = vmatprep.mubr.msk.bf16.mxu0 %vm1316_vm0, %v1315_v1  ;;  %1256 = vmatpush3.bf16.msra.mxu0 %v1287_v30 }
 0x183   : > { %1257 = vmatprep.subr.bf16.mxu0 %v1315_v1 }
 0x23c   : > { %v556_v36 = vpop.f32.mrb[4].mxu0 }
 0x23d   : > { %v1211_v37 = vpop.f32.mrb[5].mxu0  ;;  %v562_v38 = vsel %vm515_vm2, %v556_v36, -inf }
 0x23e   : > { %563 = vmax.xlane.f32.xlu1 %v562_v38  ;;  %v559_v39 = vpop.f32.mrb[6].mxu0 }
 0x23f   : > { %v1212_v40 = vpop.f32.mrb[7].mxu0 }
 0x244   : > { %v666_v41 = vpop.f32.mrb[8].mxu0 }
 0x245   : > { %v1223_v42 = vpop.f32.mrb[9].mxu0  ;;  %v672_v43 = vsel %vm515_vm2, %v666_v41, -inf }
 0x246   : > { %673 = vmax.xlane.f32.xlu0 %v672_v43  ;;  %v669_v44 = vpop.f32.mrb[10].mxu0 }
 0x247   : > { %v1224_v45 = vpop.f32.mrb[11].mxu0  ;;  %v1288_v44 = vld [vmem:[%s1525_s6 + $0x8] sm:$0xff]  }
 0x248   : > { %1258 = vmatpush3.bf16.msra.mxu0 %v1288_v44 }
 0x24c   : > { %v777_v46 = vpop.f32.mrb[12].mxu0 }
 0x24d   : > { %v1235_v47 = vpop.f32.mrb[13].mxu0  ;;  %v783_v48 = vsel %vm515_vm2, %v777_v46, -inf }
 0x24e   : > { %784 = vmax.xlane.f32.xlu0 %v783_v48  ;;  %v780_v49 = vpop.f32.mrb[14].mxu0 }
 0x24f   : > { %793 = vrot.lane.b32.xlu1 %v572_v34, %s1322_s18  ;;  %v1236_v50 = vpop.f32.mrb[15].mxu0 }
 0x254   : > { %v887_v51 = vpop.f32.mrb[16].mxu0 }
 0x255   : > { %v1247_v52 = vpop.f32.mrb[17].mxu0  ;;  %v893_v55 = vsel %vm515_vm2, %v887_v51, -inf }
 0x256   : > { %v890_v53 = vpop.f32.mrb[18].mxu0 }
 0x257   : > { %v1248_v54 = vpop.f32.mrb[19].mxu0 }
 0x264   : > { %683 = vrot.lane.b32.xlu0 %v572_v34, %s1317_s30 }
 0x273   : > { %894 = vmax.xlane.f32.xlu1 %v893_v55 }
 0x284   : > { %903 = vrot.lane.b32.xlu1 %v572_v34, %s1323_s20  ;;  %s371_s20 = scalar_lea.vmem %s1529_s10, %s1403_s19 }
 0x2cb   : > { %v564_v56 = vpop.xlane.xlu1 %563 }
 0x2cc   : > { %v565_v57 = vsub.f32 %v556_v36, %v564_v56 }
 0x2ce   : > { %v566_v58 = vmul.f32 1.442695, %v565_v57 }
 0x2cf   : > { %v794_v8 = vpop.permute.xlu1 %793 }
 0x2d0   : > { %1289 = vpow2.f32 %v566_v58  ;;  %v799_v11 = vsel %vm576_vm3, %v794_v8, 0 }
 0x2d3   : > { %v674_v59 = vpop.xlane.xlu0 %673 }
 0x2d4   : > { %v675_v60 = vsub.f32 %v666_v41, %v674_v59 }
 0x2d6   : > { %v676_v61 = vmul.f32 1.442695, %v675_v60  ;;  %v1158_v60 = vld [vmem:[%s1526_s7] ss:$0 sm:$0xff] }
 0x2d8   : > { %1291 = vpow2.f32 %v676_v61 }
 0x2da   : > { %v1290_v62 = vpop.eup %1289 }
 0x2db   : > { %v785_v63 = vpop.xlane.xlu0 %784  ;;  %v571_v0 = vpack.c.bf16 %v1290_v62, %v1290_v62  ;;  %v568_v23 = vsel %vm515_vm2, %v1290_v62, 0.0 }
 0x2dc   : > { %v786_v2 = vsub.f32 %v777_v46, %v785_v63 }
 0x2dd   : > { %1216 = vmatmul.mubr.msk.bf16.vlgmr.msra.gmra.mrb[4].mxu1 %vm515_vm2, %v571_v0 }
 0x2de   : > { %v787_v4 = vmul.f32 1.442695, %v786_v2  ;;  %1227 = vmatprep.mubr.msk.bf16.mxu1 %vm1316_vm0, %v1315_v1 }
 0x2df   : > { %v684_v5 = vpop.permute.xlu0 %683 }
 0x2e0   : > { %1293 = vpow2.f32 %v787_v4  ;;  %v689_v6 = vsel %vm576_vm3, %v684_v5, 0 }
 0x2e1   : > { %1226 = vmatpush3.bf16.msra.mxu1 %v689_v6 }
 0x2e2   : > { %v1292_v7 = vpop.eup %1291  ;;  %1237 = vmatprep.subr.bf16.mxu1 %v1315_v1 }
 0x2e3   : > { %v678_v9 = vsel %vm515_vm2, %v1292_v7, 0.0  ;;  %v681_v10 = vpack.c.bf16 %v1292_v7, %v1292_v7 }
 0x2e4   : > { %679 = vadd.xlane.f32.xlu0 %v678_v9 }
 0x2e5   : > { %1228 = vmatmul.mubr.msk.bf16.vlgmr.msra.gmra.mrb[8].mxu1 %vm515_vm2, %v681_v10 }
 0x2e6   : > { %1238 = vmatpush3.bf16.msra.mxu1 %v799_v11  ;;  %1239 = vmatprep.mubr.msk.bf16.mxu1 %vm1316_vm0, %v1315_v1 }
 0x2e7   : > { %1249 = vmatprep.subr.bf16.mxu1 %v1315_v1 }
 0x2ea   : > { %v1294_v12 = vpop.eup %1293 }
 0x2eb   : > { %v789_v13 = vsel %vm515_vm2, %v1294_v12, 0.0  ;;  %v792_v14 = vpack.c.bf16 %v1294_v12, %v1294_v12 }
 0x2ec   : > { %790 = vadd.xlane.f32.xlu1 %v789_v13 }
 0x2ed   : > { %1240 = vmatmul.mubr.msk.bf16.vlgmr.msra.gmra.mrb[12].mxu1 %vm515_vm2, %v792_v14 }
 0x2ee   : > { %1251 = vmatprep.mubr.msk.bf16.mxu1 %vm1316_vm0, %v1315_v1 }
 0x300   : > { %v895_v15 = vpop.xlane.xlu1 %894 }
 0x301   : > { %v896_v16 = vsub.f32 %v887_v51, %v895_v15 }
 0x303   : > { %v897_v17 = vmul.f32 1.442695, %v896_v16  ;;  %v1163_v16 = vld [vmem:[%s1528_s9] ss:$0 sm:$0xff] }
 0x304   : > { %v904_v18 = vpop.permute.xlu1 %903 }
 0x305   : > { %1295 = vpow2.f32 %v897_v17  ;;  %v909_v19 = vsel %vm576_vm3, %v904_v18, 0 }
 0x306   : > { %1250 = vmatpush3.bf16.msra.mxu1 %v909_v19 }
 0x30f   : > { %v1296_v20 = vpop.eup %1295 }
 0x310   : > { %v899_v21 = vsel %vm515_vm2, %v1296_v20, 0.0  ;;  %v902_v22 = vpack.c.bf16 %v1296_v20, %v1296_v20 }
 0x311   : > { %900 = vadd.xlane.f32.xlu0 %v899_v21 }
 0x312   : > { %1252 = vmatmul.mubr.msk.bf16.vlgmr.msra.gmra.mrb[16].mxu1 %vm515_vm2, %v902_v22 }
 0x315   : > { %569 = vadd.xlane.f32.xlu0 %v568_v23 }
 0x371   : > { %v680_v24 = vpop.xlane.xlu0 %679 }
 0x372   : > { %1297 = vrcp.f32 %v680_v24 }
 0x379   : > { %v791_v28 = vpop.xlane.xlu1 %790 }
 0x37a   : > { %1299 = vrcp.f32 %v791_v28 }
 0x37c   : > { %v1298_v31 = vpop.eup %1297 }
 0x384   : > { %v1300_v37 = vpop.eup %1299 }
 0x39e   : > { %v901_v43 = vpop.xlane.xlu0 %900 }
 0x39f   : > { %1301 = vrcp.f32 %v901_v43 }
 0x3a2   : > { %v570_v50 = vpop.xlane.xlu0 %569 }
 0x3a3   : > { %1303 = vrcp.f32 %v570_v50 }
 0x3a9   : > { %v1302_v1 = vpop.eup %1301 }
 0x3ad   : > { %v1304_v51 = vpop.eup %1303 }
 0x3b0   : > { %v614_v25 = vpop.f32.mrb[4].mxu1 }
 0x3b1   : > { %v1217_v26 = vpop.f32.mrb[5].mxu1  ;;  %v621_v53 = vmul.f32 %v1304_v51, %v614_v25 }
 0x3b2   : > { %v617_v27 = vpop.f32.mrb[6].mxu1 }
 0x3b3   : > { %v1218_v29 = vpop.f32.mrb[7].mxu1 }
 0x3b8   : > { %v725_v32 = vpop.f32.mrb[8].mxu1 }
 0x3b9   : > { %v732_v33 = vmul.f32 %v1298_v31, %v725_v32  ;;  %v1229_v34 = vpop.f32.mrb[9].mxu1 }
 0x3ba   : > { %v728_v35 = vpop.f32.mrb[10].mxu1 }
 0x3bb   : > { %v1230_v36 = vpop.f32.mrb[11].mxu1  ;;  %954 = vrot.lane.b32.xlu1 %v732_v33, %s1324_s25 }
 0x3c0   : > { %v835_v38 = vpop.f32.mrb[12].mxu1 }
 0x3c1   : > { %v842_v39 = vmul.f32 %v1300_v37, %v835_v38  ;;  %v1241_v40 = vpop.f32.mrb[13].mxu1 }
 0x3c2   : > { %v838_v41 = vpop.f32.mrb[14].mxu1 }
 0x3c3   : > { %v1242_v42 = vpop.f32.mrb[15].mxu1  ;;  %958 = vrot.lane.b32.xlu0 %v842_v39, %s1325_s26 }
 0x3e5   : > { %v945_v45 = vpop.f32.mrb[16].mxu1 }
 0x3e6   : > { %v952_v46 = vmul.f32 %v1302_v1, %v945_v45  ;;  %v1253_v47 = vpop.f32.mrb[17].mxu1 }
 0x3e7   : > { %v948_v48 = vpop.f32.mrb[18].mxu1 }
 0x3e8   : > { %962 = vrot.lane.b32.xlu1 %v952_v46, %s1326_s29  ;;  %v1254_v49 = vpop.f32.mrb[19].mxu1 }
 0x42d   : > { %v955_v52 = vpop.permute.xlu1 %954 }
 0x42e   : > { %v965_v55 = vsel %vm515_vm2, %v621_v53, %v955_v52 }
 0x435   : > { %v959_v54 = vpop.permute.xlu0 %958 }
 0x436   : > { %v967_v56 = vsel %vm966_vm4, %v965_v55, %v959_v54 }
 0x45a   : > { %v963_v57 = vpop.permute.xlu1 %962 }
 0x45b   : > { %v969_v58 = vsel %vm968_vm5, %v967_v56, %v963_v57 }
 0x45c   : > { %v970_v59 = vpack.c.bf16 %v969_v58, %v969_v58 }
 0x45e   : > { %1260 = vmatmul.mubr.msk.bf16.vlgmr.msra.gmra.mrb[20].mxu0 %vm400_vm1, %v970_v59 }
 0x531   : > { %v1031_v61 = vpop.f32.mrb[20].mxu0 }
 0x532   : > { %v1032_v62 = vadd.f32 %v1158_v60, %v1031_v61  ;;  %v1261_v63 = vpop.f32.mrb[21].mxu0 }
 0x533   : > { %v1034_v0 = vpop.f32.mrb[22].mxu0 }
 0x534   : > { %v1262_v2 = vpop.f32.mrb[23].mxu0  ;;  %v1037_v4 = vadd.f32 %v1032_v62, %v1414_v3  ;;  %v1162_v3 = vld [vmem:[%s1527_s8] ss:$0 sm:$0xff] }
 0x536   : > { %v1040_v5 = vsel %vm400_vm1, %v1037_v4, 0.0 }
 0x537   : > { %1041 = vadd.xlane.f32.xlu1 %v1040_v5 }
 0x5c4   : > { %v1042_v6 = vpop.xlane.xlu1 %1041 }
 0x5c5   : > { %v1044_v7 = vmul.f32 0.03125, %v1042_v6 }
 0x5c7   : > { %v1045_v8 = vsub.f32 %v1037_v4, %v1044_v7 }
 0x5c9   : > { %v1046_v9 = vmul.f32 %v1045_v8, %v1045_v8 }
 0x5cb   : > { %v1047_v10 = vsel %vm400_vm1, %v1046_v9, 0.0 }
 0x5cc   : > { %1048 = vadd.xlane.f32.xlu0 %v1047_v10 }
 0x659   : > { %v1049_v11 = vpop.xlane.xlu0 %1048 }
 0x65a   : > { %v1050_v12 = vmul.f32 0.03125, %v1049_v11 }
 0x65c   : > { %v1051_v13 = vadd.f32 1e-05, %v1050_v12 }
 0x65e   : > { %1305 = vrsqrt.f32 %v1051_v13 }
 0x668   : > { %v1306_v14 = vpop.eup %1305 }
 0x669   : > { %v1053_v15 = vmul.f32 %v1306_v14, %v1045_v8 }
 0x66b   : > { %v1060_v17 = vmul.f32 %v1162_v3, %v1053_v15 }
 0x66d   : > { %v1067_v18 = vadd.f32 %v1163_v16, %v1060_v17 }
 0x66f   : > { %1068 = vst.msk [vmem:[%s371_s20] sm:$0xff] %vm400_vm1, %v1067_v18 }
 0x670 PF: > { %s20_s13 = sadd.s32 1, %s1313_s13  }
 0x671   : > { %p17_p4 = scmp.ge.s32.totalorder %s20_s13, 4  }
 0x673   :  { %19 = sbr.rel (!%p17_p4) target bundleno = 1 (0x1), region = 93 }

</bundles_post_ra>
